<compile_context>
chip_gen: v7x
topology: tpu7x:2x2x1
jax: 0.10.0
libtpu: 0.0.40
codegen_flags: <defaults>
</compile_context>

<pallas_src>
import functools

import jax
import jax.numpy as jnp
from jax import lax
from jax.experimental import pallas as pl
from jax.experimental.pallas import tpu as pltpu


_TILE_BYTES = 8 * 1024 * 1024     # input bytes DMA'd per grid step (x2 for double-buffering)
_CHUNK_ELEMS = 256 * 1024         # elements per inner compute chunk (~1 MiB f32 temporaries)
_VMEM_LIMIT = 48 * 1024 * 1024    # <= v7x physical 64 MiB; explicit for v5e's 16 MiB default


def _entropy_block_kernel(x_ref, out_ref, *, eps, lead, block_rows, chunk_rows, need_mask):
    """Partial sum of x*log(x+eps) over one (block_rows, d1, d2) input tile.

    x_ref  : (block_rows, d1, d2) tile of the input (original dtype).
    out_ref: (1, d1, d2) f32 partial-sum slab for this grid step.
    """
    d1, d2 = x_ref.shape[1], x_ref.shape[2]
    base = pl.program_id(0) * block_rows
    num_chunks = block_rows // chunk_rows  # static

    def body(i, acc):
        start = pl.multiple_of(i * chunk_rows, chunk_rows)
        xc = x_ref[pl.ds(start, chunk_rows), :, :].astype(jnp.float32)
        contrib = xc * jnp.log(xc + eps)                      # VPU mul + EUP log
        if need_mask:
            # Mask rows past the true leading extent (ragged last block).
            # jnp.where is a select, so NaN/Inf from stale padding never leaks.
            row = base + start + lax.broadcasted_iota(jnp.int32, contrib.shape, 0)
            contrib = jnp.where(row < lead, contrib, 0.0)
        return acc + jnp.sum(contrib, axis=0)                 # leading-axis reduce (VPU adds)

    acc = lax.fori_loop(0, num_chunks, body, jnp.zeros((d1, d2), jnp.float32))
    out_ref[0, :, :] = acc


def entropy_loss_encap(x: jax.Array, eps: float = 1e-12,
                       tile_bytes: int = _TILE_BYTES,
                       chunk_elems: int = _CHUNK_ELEMS) -> jax.Array:
    """Pallas-TPU equivalent of EntropyLossEncap(eps)(x).  Requires x.ndim >= 2."""
    if x.ndim < 2:
        raise ValueError("EntropyLossEncap expects an input with at least 2 dims")
    c = x.shape[1]
    numel = x.size
    num_rows = numel // c                      # rows of the (-1, C) view; divisor of the mean

    # Collapse ONLY the leading dims; the trailing two dims keep their natural
    # (tiled) layout, so this reshape is a free view (no relayout / no copy).
    if x.ndim >= 3:
        d1, d2 = x.shape[-2], x.shape[-1]
    else:
        d1, d2 = x.shape                       # 2-D input: single leading "row"
    lead = numel // (d1 * d2)
    x3 = x.reshape(lead, d1, d2)

    itemsize = x.dtype.itemsize
    elems_per_row = d1 * d2

    # Inner compute chunk: bounds the f32 cast/log/mask temporaries.
    chunk_rows = max(1, min(chunk_elems // max(elems_per_row, 1), lead))

    # Outer DMA tile: dtype-aware, byte-based, a multiple of chunk_rows.
    rows_for_tile = (tile_bytes // max(elems_per_row * itemsize, 1)) // chunk_rows * chunk_rows
    tile_rows = max(chunk_rows, rows_for_tile)
    lead_ceil = ((lead + chunk_rows - 1) // chunk_rows) * chunk_rows
    tile_rows = min(tile_rows, lead_ceil)

    num_blocks = pl.cdiv(lead, tile_rows)
    need_mask = (lead % tile_rows) != 0        # only then can stale rows appear

    kernel = functools.partial(
        _entropy_block_kernel, eps=float(eps), lead=lead,
        block_rows=tile_rows, chunk_rows=chunk_rows, need_mask=need_mask)

    cost = pl.CostEstimate(
        flops=3 * numel,
        transcendentals=numel,
        bytes_accessed=numel * itemsize + num_blocks * elems_per_row * 4)

    partials = pl.pallas_call(
        kernel,
        out_shape=jax.ShapeDtypeStruct((num_blocks, d1, d2), jnp.float32),
        grid=(num_blocks,),
        in_specs=[pl.BlockSpec((tile_rows, d1, d2), lambda i: (i, 0, 0))],
        out_specs=pl.BlockSpec((1, d1, d2), lambda i: (i, 0, 0)),
        compiler_params=pltpu.CompilerParams(
            dimension_semantics=("parallel",),   # independent blocks
            vmem_limit_bytes=_VMEM_LIMIT,
        ),
        cost_estimate=cost,
    )(x3)

    # Tiny finalize: global sum of per-block partial slabs; negation folded in.
    return jnp.sum(partials) * (-1.0 / num_rows)


def _reference(x, eps=1e-12):
    c = x.shape[1]
    score = x.reshape(-1, c).astype(jnp.float32)     # torch .contiguous().view(-1, C)
    b = score * jnp.log(score + eps)
    return jnp.mean(-jnp.sum(b, axis=1))


if __name__ == "__main__":
    key = jax.random.PRNGKey(0)

    # NCHW feature map, as the PyTorch module expects (e.g. softmax scores).
    N, C, H, W = 2, 4, 16, 16
    logits = jax.random.normal(key, (N, C, H, W), dtype=jnp.float32)
    x = jax.nn.softmax(logits, axis=1)               # non-negative "score" map

    loss = entropy_loss_encap(x)
    jax.block_until_ready(loss)
    ref = _reference(x)
    assert jnp.allclose(loss, ref, rtol=1e-5, atol=1e-6), (loss, ref)

    # Second check with tiny tile overrides to exercise multi-block, the
    # ragged last block, and the in-kernel tail mask.
    key2 = jax.random.PRNGKey(0)
    logits2 = jax.random.normal(key2, (3, 3, 8, 16), dtype=jnp.float32)
    x2 = jax.nn.softmax(logits2, axis=1)
    loss2 = entropy_loss_encap(x2, tile_bytes=2048, chunk_elems=256)
    jax.block_until_ready(loss2)
    ref2 = _reference(x2)
    assert jnp.allclose(loss2, ref2, rtol=1e-5, atol=1e-6), (loss2, ref2)

    print("KERNEL_OK")
</pallas_src>

<mosaic_0001>
module attributes {stable_mosaic.version = 11 : i64} {
  func.func @_entropy_block_kernel(%arg0: i32, %arg1: memref<8x16x16xf32, #tpu.memory_space<vmem>>, %arg2: memref<1x16x16xf32, #tpu.memory_space<vmem>>) attributes {dimension_semantics = [#tpu.dimension_semantics<parallel>], iteration_bounds = array<i64: 1>, scalar_prefetch = 0 : i64, scratch_operands = 0 : i64, tpu.core_type = #tpu.core_type<tc>, window_params = [{transform_indices = @transform_0, window_bounds = array<i64: 8, 16, 16>}, {transform_indices = @transform_1, window_bounds = array<i64: 1, 16, 16>}]} {
    %cst = arith.constant 0.000000e+00 : f32
    %0 = vector.broadcast %cst : f32 to vector<16x16xf32>
    %c0_i32 = arith.constant 0 : i32
    %c8_i32 = arith.constant 8 : i32
    %1 = arith.muli %c0_i32, %c8_i32 : i32
    %2 = tpu.assume_multiple %1, 8 : i32
    %3 = arith.index_cast %2 : i32 to index
    %c0 = arith.constant 0 : index
    %c0_0 = arith.constant 0 : index
    %4 = vector.load %arg1[%3, %c0, %c0_0] : memref<8x16x16xf32, #tpu.memory_space<vmem>>, vector<8x16x16xf32>
    %cst_1 = arith.constant 9.99999996E-13 : f32
    %5 = vector.broadcast %cst_1 : f32 to vector<8x16x16xf32>
    %6 = arith.addf %4, %5 : vector<8x16x16xf32>
    %7 = math.log %6 : vector<8x16x16xf32>
    %8 = arith.mulf %4, %7 : vector<8x16x16xf32>
    %cst_2 = arith.constant dense<0.000000e+00> : vector<16x16xf32>
    %9 = vector.multi_reduction <add>, %8, %cst_2 [0] : vector<8x16x16xf32> to vector<16x16xf32>
    %10 = arith.addf %0, %9 : vector<16x16xf32>
    %c1_i32 = arith.constant 1 : i32
    %c0_3 = arith.constant 0 : index
    %c0_4 = arith.constant 0 : index
    %c0_5 = arith.constant 0 : index
    %11 = vector.load %arg2[%c0_3, %c0_4, %c0_5] : memref<1x16x16xf32, #tpu.memory_space<vmem>>, vector<1x16x16xf32>
    %12 = vector.shape_cast %11 : vector<1x16x16xf32> to vector<16x16xf32>
    %13 = vector.shape_cast %10 : vector<16x16xf32> to vector<1x16x16xf32>
    tpu.vector_store %arg2[%c0_3, %c0_4, %c0_5], %13 {strides = array<i32>} : memref<1x16x16xf32, #tpu.memory_space<vmem>>, vector<1x16x16xf32>,
    return
  }
  func.func @transform_0(%arg0: i32) -> (i32, i32, i32) {
    %c0_i32 = arith.constant 0 : i32
    %c0_i32_0 = arith.constant 0 : i32
    %c0_i32_1 = arith.constant 0 : i32
    return %arg0, %c0_i32, %c0_i32_0 : i32, i32, i32
  }
  func.func @transform_1(%arg0: i32) -> (i32, i32, i32) {
    %c0_i32 = arith.constant 0 : i32
    %c0_i32_0 = arith.constant 0 : i32
    %c0_i32_1 = arith.constant 0 : i32
    return %arg0, %c0_i32, %c0_i32_0 : i32, i32, i32
  }
}

</mosaic_0001>

<bundles_post_ra>
// kernel: tpu_custom_call.1
= control target key start
LH: loop header
LB: loop body
LE: loop exit
PB: predicated region body
PF: predicated region fallthrough
CT: control target
= control target key end

     0   :  { %6 = vsyncpa [#allocation3], 0  ;;  %s355_s0 = inlined_call_operand.hbm [shape: f32[8,16,16], index: 0, kind: input, shape index: {}]   ;;  %s356_s1 = inlined_call_operand.hbm [shape: f32[1,16,16], index: 1, kind: output, shape index: {}]  }
   0x1   :  { %7 = vsyncpa [#allocation4], 0  ;;  %s241_s6 = smov [#allocation2]   ;;  %s193_s10 = scalar_lea.hbm %s355_s0, 2048 }
   0x2   :  { %s13_s7 = sshll.u32 %s241_s6, 4  ;;  %p194_p0 = scmp.ne.s32.totalorder %s355_s0, %s193_s10  ;;  %s14_s7 = int_to_ptr.vmem [resolvable:$true] %s13_s7 }
   0x3   :  { %p197_p1 = scmp.lt.u32.totalorder %s193_s10, %s355_s0 }
   0x5   :  { %p199_p2 = pnand %p197_p1, %p194_p0 }
   0x7   :  { %202 = shalt.err (!%p199_p2)
}
   0x8   :  { %s203_s15 = scalar_lea.vmem %s14_s7, 2048  ;;  %p208_p4 = scmp.lt.s32.totalorder %s14_s7, %s14_s7 }
   0x9   :  { %p204_p3 = scmp.ne.s32.totalorder %s14_s7, %s203_s15  ;;  %p209_p5 = scmp.lt.s32.totalorder %s203_s15, %s203_s15 }
   0xb   :  { %p210_p6 = por %p209_p5, %p208_p4 }
   0xd   :  { %p211_p7 = pnand %p210_p6, %p204_p3 }
   0xf   :  { %214 = shalt.err (!%p211_p7)
}
  0x10   :  { %s242_s16 = smov 128   ;;  %s243_s17 = smov 8  }
  0x11   :  { %19 = dma.hbm_to_vmem [thread:$0]  %s355_s0, 2048, %s14_s7, [#allocation3], %s242_s16, %s242_s16, %s243_s17  }
  0x12   :  { %237 = dma.done.wait [#allocation3], 2048  }
  0x13   :  { %238 = vsyncadd [#allocation3], 4294965248  ;;  %v25_v0 = vld [vmem:[#allocation2] sm:$0xff]  ;;  %v27_v1 = vld [vmem:[#allocation2 + $0x10] sm:$0xff]  ;;  %vm105_vm0 = vcmask 130048   ;;  %s244_s0 = smov [#allocation5]  }
  0x14   :  { %v29_v2 = vld [vmem:[#allocation2 + $0x20] sm:$0xff]  ;;  %v270_v3 = vld [vmem:[#allocation2 + $0x30] sm:$0xff]  ;;  %v41_v6 = vadd.f32 1e-12, %v25_v0  ;;  %v43_v8 = vadd.f32 1e-12, %v27_v1 }
  0x15   :  { %v272_v4 = vld [vmem:[#allocation2 + $0x40] sm:$0xff]  ;;  %v274_v5 = vld [vmem:[#allocation2 + $0x50] sm:$0xff]  ;;  %v45_v9 = vadd.f32 1e-12, %v29_v2  ;;  %v47_v11 = vadd.f32 1e-12, %v270_v3 }
  0x16   :  { %v276_v7 = vld [vmem:[#allocation2 + $0x60] sm:$0xff]  ;;  %v278_v10 = vld [vmem:[#allocation2 + $0x70] sm:$0xff]  ;;  %v49_v12 = vadd.f32 1e-12, %v272_v4  ;;  %161 = vlog2.f32 %v41_v6  ;;  %v51_v13 = vadd.f32 1e-12, %v274_v5 }
  0x17   :  { %163 = vlog2.f32 %v43_v8  ;;  %v283_v14 = vld [vmem:[#allocation2 + $0x8] sm:$0xff]  ;;  %v53_v15 = vadd.f32 1e-12, %v276_v7  ;;  %v286_v16 = vld [vmem:[#allocation2 + $0x18] sm:$0xff]  ;;  %v55_v17 = vadd.f32 1e-12, %v278_v10 }
  0x18   :  { %165 = vlog2.f32 %v45_v9  ;;  %v289_v18 = vld [vmem:[#allocation2 + $0x28] sm:$0xff]  ;;  %v291_v19 = vld [vmem:[#allocation2 + $0x38] sm:$0xff]  ;;  %v42_v20 = vadd.f32 1e-12, %v283_v14  ;;  %v44_v22 = vadd.f32 1e-12, %v286_v16 }
  0x19   :  { %167 = vlog2.f32 %v47_v11  ;;  %v294_v21 = vld [vmem:[#allocation2 + $0x48] sm:$0xff]  ;;  %v297_v23 = vld [vmem:[#allocation2 + $0x58] sm:$0xff]  ;;  %v46_v24 = vadd.f32 1e-12, %v289_v18  ;;  %v48_v26 = vadd.f32 1e-12, %v291_v19 }
  0x1a   :  { %169 = vlog2.f32 %v49_v12  ;;  %v300_v25 = vld [vmem:[#allocation2 + $0x68] sm:$0xff]  ;;  %v303_v27 = vld [vmem:[#allocation2 + $0x78] sm:$0xff]  ;;  %v50_v28 = vadd.f32 1e-12, %v294_v21  ;;  %v52_v29 = vadd.f32 1e-12, %v297_v23 }
  0x1b   :  { %171 = vlog2.f32 %v51_v13  ;;  %v54_v31 = vadd.f32 1e-12, %v300_v25  ;;  %v56_v34 = vadd.f32 1e-12, %v303_v27  ;;  %s145_s20 = sshll.u32 %s244_s0, 4  ;;  %s146_s20 = int_to_ptr.vmem [resolvable:$true] %s145_s20 }
  0x1c   :  { %173 = vlog2.f32 %v53_v15  ;;  %s215_s21 = scalar_lea.vmem %s146_s20, 256  ;;  %p220_p9 = scmp.lt.s32.totalorder %s146_s20, %s146_s20 }
  0x1d   :  { %175 = vlog2.f32 %v55_v17  ;;  %p216_p8 = scmp.ne.s32.totalorder %s146_s20, %s215_s21  ;;  %p221_p10 = scmp.lt.s32.totalorder %s215_s21, %s215_s21 }
  0x1e   :  { %177 = vlog2.f32 %v42_v20 }
  0x1f   :  { %179 = vlog2.f32 %v44_v22  ;;  %p222_p11 = por %p221_p10, %p220_p9 }
  0x20   :  { %v162_v30 = vpop.eup %161  ;;  %181 = vlog2.f32 %v46_v24 }
  0x21   :  { %v164_v32 = vpop.eup %163  ;;  %v58_v33 = vmul.f32 0.6931472, %v162_v30  ;;  %183 = vlog2.f32 %v48_v26  ;;  %p223_p12 = pnand %p222_p11, %p216_p8 }
  0x22   :  { %v166_v35 = vpop.eup %165  ;;  %v62_v36 = vmul.f32 0.6931472, %v164_v32  ;;  %185 = vlog2.f32 %v50_v28 }
  0x23   :  { %v168_v37 = vpop.eup %167  ;;  %v66_v38 = vmul.f32 0.6931472, %v166_v35  ;;  %v89_v39 = vmul.f32 %v58_v33, %v25_v0  ;;  %187 = vlog2.f32 %v52_v29 }
  0x24   :  { %v170_v40 = vpop.eup %169  ;;  %v70_v41 = vmul.f32 0.6931472, %v168_v37  ;;  %v91_v42 = vmul.f32 %v62_v36, %v27_v1  ;;  %189 = vlog2.f32 %v54_v31 }
  0x25   :  { %v172_v43 = vpop.eup %171  ;;  %v74_v44 = vmul.f32 0.6931472, %v170_v40  ;;  %v93_v45 = vmul.f32 %v66_v38, %v29_v2  ;;  %v106_v46 = vsel %vm105_vm0, %v89_v39, 0.0  ;;  %191 = vlog2.f32 %v56_v34 }
  0x26   :  { %v174_v47 = vpop.eup %173  ;;  %v78_v48 = vmul.f32 0.6931472, %v172_v43  ;;  %v95_v49 = vmul.f32 %v70_v41, %v270_v3  ;;  %v107_v50 = vsel %vm105_vm0, %v91_v42, 0.0 }
  0x27   :  { %v176_v51 = vpop.eup %175  ;;  %v82_v52 = vmul.f32 0.6931472, %v174_v47  ;;  %v97_v53 = vmul.f32 %v74_v44, %v272_v4  ;;  %v108_v54 = vadd.f32 %v107_v50, %v106_v46  ;;  %v109_v55 = vsel %vm105_vm0, %v93_v45, 0.0 }
  0x28   :  { %v178_v56 = vpop.eup %177  ;;  %v86_v57 = vmul.f32 0.6931472, %v176_v51  ;;  %v99_v58 = vmul.f32 %v78_v48, %v274_v5  ;;  %v111_v59 = vsel %vm105_vm0, %v95_v49, 0.0 }
  0x29   :  { %v180_v60 = vpop.eup %179  ;;  %v101_v61 = vmul.f32 %v82_v52, %v276_v7  ;;  %v110_v62 = vadd.f32 %v109_v55, %v108_v54  ;;  %v60_v63 = vmul.f32 0.6931472, %v178_v56  ;;  %v113_v2 = vsel %vm105_vm0, %v97_v53, 0.0 }
  0x2a   :  { %v182_v0 = vpop.eup %181  ;;  %v103_v1 = vmul.f32 %v86_v57, %v278_v10  ;;  %v64_v3 = vmul.f32 0.6931472, %v180_v60  ;;  %v115_v5 = vsel %vm105_vm0, %v99_v58, 0.0 }
  0x2b   :  { %v184_v4 = vpop.eup %183  ;;  %v112_v6 = vadd.f32 %v111_v59, %v110_v62  ;;  %v68_v8 = vmul.f32 0.6931472, %v182_v0  ;;  %v90_v9 = vmul.f32 %v60_v63, %v283_v14  ;;  %v117_v12 = vsel %vm105_vm0, %v101_v61, 0.0 }
  0x2c   :  { %v186_v11 = vpop.eup %185  ;;  %v72_v13 = vmul.f32 0.6931472, %v184_v4  ;;  %v92_v7 = vmul.f32 %v64_v3, %v286_v16  ;;  %v119_v26 = vsel %vm105_vm0, %v103_v1, 0.0 }
  0x2d   :  { %v188_v15 = vpop.eup %187  ;;  %v114_v17 = vadd.f32 %v113_v2, %v112_v6  ;;  %v76_v20 = vmul.f32 0.6931472, %v186_v11  ;;  %v94_v10 = vmul.f32 %v68_v8, %v289_v18  ;;  %v121_v22 = vsel %vm105_vm0, %v90_v9, 0.0 }
  0x2e   :  { %v190_v24 = vpop.eup %189  ;;  %v80_v28 = vmul.f32 0.6931472, %v188_v15  ;;  %v96_v14 = vmul.f32 %v72_v13, %v291_v19  ;;  %v122_v29 = vsel %vm105_vm0, %v92_v7, 0.0 }
  0x2f   :  { %v192_v30 = vpop.eup %191  ;;  %v116_v31 = vadd.f32 %v115_v5, %v114_v17  ;;  %v84_v32 = vmul.f32 0.6931472, %v190_v24  ;;  %v98_v16 = vmul.f32 %v76_v20, %v294_v21  ;;  %v123_v33 = vadd.f32 %v122_v29, %v121_v22 }
  0x30   :  { %v88_v34 = vmul.f32 0.6931472, %v192_v30  ;;  %v100_v35 = vmul.f32 %v80_v28, %v297_v23  ;;  %v124_v18 = vsel %vm105_vm0, %v94_v10, 0.0  ;;  %v126_v36 = vsel %vm105_vm0, %v96_v14, 0.0 }
  0x31   :  { %v118_v37 = vadd.f32 %v117_v12, %v116_v31  ;;  %v125_v38 = vadd.f32 %v124_v18, %v123_v33  ;;  %v102_v39 = vmul.f32 %v84_v32, %v300_v25  ;;  %v128_v19 = vsel %vm105_vm0, %v98_v16, 0.0 }
  0x32   :  { %v104_v42 = vmul.f32 %v88_v34, %v303_v27  ;;  %v130_v21 = vsel %vm105_vm0, %v100_v35, 0.0 }
  0x33   :  { %v120_v40 = vadd.f32 %v119_v26, %v118_v37  ;;  %v127_v41 = vadd.f32 %v126_v36, %v125_v38  ;;  %v132_v23 = vsel %vm105_vm0, %v102_v39, 0.0 }
  0x34   :  { %v134_v45 = vsel %vm105_vm0, %v104_v42, 0.0 }
  0x35   :  { %138 = vst.msk [vmem:[#allocation5] sm:$0xff] %vm105_vm0, %v120_v40  ;;  %v129_v43 = vadd.f32 %v128_v19, %v127_v41 }
  0x37   :  { %v131_v44 = vadd.f32 %v130_v21, %v129_v43 }
  0x39   :  { %v133_v46 = vadd.f32 %v132_v23, %v131_v44 }
  0x3b   :  { %v135_v25 = vadd.f32 %v134_v45, %v133_v46 }
  0x3d   :  { %139 = vst.msk [vmem:[#allocation5 + $0x8] sm:$0xff] %vm105_vm0, %v135_v25 }
  0x3e   :  { %226 = shalt.err (!%p223_p12)
}
  0x3f   :  { %s227_s24 = scalar_lea.hbm %s356_s1, 256 }
  0x40   :  { %p228_p13 = scmp.ne.s32.totalorder %s356_s1, %s227_s24  ;;  %p231_p0 = scmp.lt.u32.totalorder %s227_s24, %s356_s1 }
  0x42   :  { %p233_p1 = pnand %p231_p0, %p228_p13 }
  0x44   :  { %236 = shalt.err (!%p233_p1)
}
  0x45   :  { %151 = dma.vmem_to_hbm [thread:$0]  %s146_s20, 256, %s356_s1, [#allocation4], %s242_s16, %s242_s16, %s243_s17  }
  0x46   :  { %239 = dma.done.wait [#allocation4], 256  }
  0x47   :  { %240 = vsyncadd [#allocation4], 4294967040 }
  0x48   :  { %155 = vsyncpa [#allocation3], 1 }
  0x49   :  { %156 = vsyncpa [#allocation4], 1 }

</bundles_post_ra>
